<compile_context>
chip_gen: v7x
topology: tpu7x:2x2x1
jax: 0.10.0
libtpu: 0.0.40
codegen_flags: <defaults>
</compile_context>

<pallas_src>
import math
import functools

import jax
import jax.numpy as jnp
from jax.experimental import pallas as pl
from jax.experimental.pallas import tpu as pltpu


# ----------------------------------------------------------------------------
# Fused projection + low-rank score kernel (one (TN, TN) output tile per step)
#   gamma_ref: (1,) in SMEM
#   x_ref : (1, TN, D)    rows i*TN .. of u_x for batch b
#   y_ref : (1, TN, D)    rows j*TN .. of u_y for batch b
#   wq_ref: (1, D, Dh)    per-head to_q weight (scaling pre-folded)
#   wk_ref: (1, D, Dh)    per-head to_k weight
#   o_ref : (1, 1, TN, TN)
# Grid = (B, I, J, H); heads innermost so x/y tiles are not re-fetched per head.
# ----------------------------------------------------------------------------
def _fused_score_kernel(gamma_ref, x_ref, y_ref, wq_ref, wk_ref, o_ref, *,
                        residual):
    x = x_ref[0]                     # (TN, D)
    y = y_ref[0]                     # (TN, D)
    wq = wq_ref[0]                   # (D, Dh)
    wk = wk_ref[0]                   # (D, Dh)

    # In-kernel projections (weights are tiny and stay in VMEM).
    q = jnp.dot(x, wq, preferred_element_type=jnp.float32)   # (TN, Dh)
    k = jnp.dot(y, wk, preferred_element_type=jnp.float32)   # (TN, Dh)

    # Score: contract last dims directly (no explicit transpose of k).
    s = jax.lax.dot_general(
        q, k,
        dimension_numbers=(((1,), (1,)), ((), ())),
        preferred_element_type=jnp.float32)                  # (TN, TN)

    if residual:
        i = pl.program_id(1)
        j = pl.program_id(2)

        @pl.when(i == j)
        def _():
            ti, tj = s.shape
            rows = jax.lax.broadcasted_iota(jnp.int32, (ti, tj), 0)
            cols = jax.lax.broadcasted_iota(jnp.int32, (ti, tj), 1)
            diag = jnp.where(rows == cols, gamma_ref[0], jnp.float32(0.0))
            o_ref[0, 0] = (s + diag).astype(o_ref.dtype)

        @pl.when(i != j)
        def _():
            o_ref[0, 0] = s.astype(o_ref.dtype)
    else:
        o_ref[0, 0] = s.astype(o_ref.dtype)


def _pick_tile(n, cap=512):
    """Largest lane-dense tile (multiple of 128, <= cap) dividing n; else full n."""
    if n <= cap:
        return n
    for t in (512, 256, 128):
        if t <= cap and n % t == 0:
            return t
    # TODO(synk): N not a multiple of 128 and > cap -> full-N blocks; add
    # padding/masked edge tiles if such shapes show up in practice.
    return n


# ----------------------------------------------------------------------------
# Forward pass of LowRankKernel at default constructor args
#   u_x : (B, N, D),  wq/wk : (H*Dh, D) nn.Linear weights,  gamma : (1,)
# Returns K : (B, H, N, N)
# ----------------------------------------------------------------------------
def low_rank_kernel_forward(u_x, wq, wk, gamma, *, heads, dim_head,
                            scaling=1.0, residual=True, u_y=None):
    if u_y is None:
        u_y = u_x
    b, n, dim = u_x.shape
    assert u_y.shape == (b, n, dim)

    # Per-head projection weights in (H, D, Dh) layout; fold `scaling` into Wq
    # (tiny O(KB) op in the wrapper instead of an N^2 vmul per tile in-kernel).
    wq_eff = wq if scaling == 1.0 else wq * jnp.asarray(scaling, wq.dtype)
    wq_h = jnp.transpose(wq_eff.T.reshape(dim, heads, dim_head), (1, 0, 2))
    wk_h = jnp.transpose(wk.T.reshape(dim, heads, dim_head), (1, 0, 2))

    tn = _pick_tile(n)
    n_tiles = n // tn
    grid = (b, n_tiles, n_tiles, heads)   # heads innermost (see notes above)

    itemsize = jnp.dtype(u_x.dtype).itemsize
    cost = pl.CostEstimate(
        # score matmul + per-step q/k projections
        flops=int(2 * b * heads * n * n * dim_head
                  + 4 * b * heads * n_tiles * n * dim * dim_head),
        transcendentals=0,
        bytes_accessed=int(b * heads * n * n * itemsize          # K writeback
                           + b * n_tiles * n * dim * itemsize    # u_y tiles
                           + b * n * dim * itemsize),            # u_x tiles
    )

    kernel = functools.partial(_fused_score_kernel, residual=residual)

    return pl.pallas_call(
        kernel,
        out_shape=jax.ShapeDtypeStruct((b, heads, n, n), u_x.dtype),
        grid_spec=pltpu.PrefetchScalarGridSpec(
            num_scalar_prefetch=0,
            grid=grid,
            in_specs=[
                pl.BlockSpec(memory_space=pltpu.SMEM),                        # gamma (1,)
                pl.BlockSpec((1, tn, dim),
                             lambda bi, ii, ji, hi: (bi, ii, 0)),             # u_x rows
                pl.BlockSpec((1, tn, dim),
                             lambda bi, ii, ji, hi: (bi, ji, 0)),             # u_y rows
                pl.BlockSpec((1, dim, dim_head),
                             lambda bi, ii, ji, hi: (hi, 0, 0)),              # Wq head
                pl.BlockSpec((1, dim, dim_head),
                             lambda bi, ii, ji, hi: (hi, 0, 0)),              # Wk head
            ],
            out_specs=pl.BlockSpec((1, 1, tn, tn),
                                   lambda bi, ii, ji, hi: (bi, hi, ii, ji)),
        ),
        compiler_params=pltpu.CompilerParams(
            dimension_semantics=("parallel", "parallel", "parallel", "parallel"),
        ),
        cost_estimate=cost,
    )(gamma, u_x, u_y, wq_h, wk_h)

    # TODO(synk): normalize / qk_norm / rope / modulation / softmax /
    # normalize_to_one / dropout branches of the PyTorch module are disabled at
    # default constructor args and are not lowered.


if __name__ == "__main__":
    # Small shapes consistent with the module.
    B, N, DIM = 2, 16, 32
    HEADS, DIM_HEAD = 4, 8
    SCALING = 1.0

    key = jax.random.PRNGKey(0)
    kx, kq, kk = jax.random.split(key, 3)

    u_x = jax.random.normal(kx, (B, N, DIM), dtype=jnp.float32)

    # Deterministic xavier-uniform-style init for to_q / to_k weights
    # (shape (H*Dh, DIM), like nn.Linear.weight).
    fan_in, fan_out = DIM, HEADS * DIM_HEAD
    bound = math.sqrt(6.0 / (fan_in + fan_out))
    wq = jax.random.uniform(kq, (fan_out, fan_in), jnp.float32, -bound, bound)
    wk = jax.random.uniform(kk, (fan_out, fan_in), jnp.float32, -bound, bound)

    # residual gamma parameter, initialized to 1/sqrt(dim_head)
    gamma = jnp.array([1.0 / math.sqrt(DIM_HEAD)], dtype=jnp.float32)

    K = low_rank_kernel_forward(
        u_x, wq, wk, gamma,
        heads=HEADS, dim_head=DIM_HEAD, scaling=SCALING, residual=True,
    )
    K = jax.block_until_ready(K)

    # Reference check in plain JAX.
    q_ref = (u_x.reshape(B * N, DIM) @ wq.T).reshape(
        B, N, HEADS, DIM_HEAD).transpose(0, 2, 1, 3)
    k_ref = (u_x.reshape(B * N, DIM) @ wk.T).reshape(
        B, N, HEADS, DIM_HEAD).transpose(0, 2, 1, 3)
    K_ref = jnp.einsum("bhid,bhjd->bhij", q_ref, k_ref) * SCALING
    K_ref = K_ref + gamma[0] * jnp.eye(N)[None, None]

    assert K.shape == (B, HEADS, N, N)
    assert K.dtype == u_x.dtype
    assert jnp.allclose(K, K_ref, atol=1e-4, rtol=1e-4)

    print("KERNEL_OK")
</pallas_src>

<mosaic_0001>
module attributes {stable_mosaic.version = 11 : i64} {
  func.func @_fused_score_kernel(%arg0: i32, %arg1: i32, %arg2: i32, %arg3: i32, %arg4: memref<1xf32, #tpu.memory_space<smem>>, %arg5: memref<1x16x32xf32, #tpu.memory_space<vmem>>, %arg6: memref<1x16x32xf32, #tpu.memory_space<vmem>>, %arg7: memref<1x32x8xf32, #tpu.memory_space<vmem>>, %arg8: memref<1x32x8xf32, #tpu.memory_space<vmem>>, %arg9: memref<1x1x16x16xf32, #tpu.memory_space<vmem>>) attributes {dimension_semantics = [#tpu.dimension_semantics<parallel>, #tpu.dimension_semantics<parallel>, #tpu.dimension_semantics<parallel>, #tpu.dimension_semantics<parallel>], iteration_bounds = array<i64: 2, 1, 1, 4>, scalar_prefetch = 0 : i64, scratch_operands = 0 : i64, tpu.core_type = #tpu.core_type<tc>, window_params = [{transform_indices = @transform_0, window_bounds = array<i64: 1>}, {transform_indices = @transform_1, window_bounds = array<i64: 1, 16, 32>}, {transform_indices = @transform_2, window_bounds = array<i64: 1, 16, 32>}, {transform_indices = @transform_3, window_bounds = array<i64: 1, 32, 8>}, {transform_indices = @transform_4, window_bounds = array<i64: 1, 32, 8>}, {transform_indices = @transform_5, window_bounds = array<i64: 1, 1, 16, 16>}]} {
    %c0 = arith.constant 0 : index
    %c0_0 = arith.constant 0 : index
    %c0_1 = arith.constant 0 : index
    %0 = vector.load %arg5[%c0, %c0_0, %c0_1] : memref<1x16x32xf32, #tpu.memory_space<vmem>>, vector<1x16x32xf32>
    %1 = vector.shape_cast %0 : vector<1x16x32xf32> to vector<16x32xf32>
    %c0_2 = arith.constant 0 : index
    %c0_3 = arith.constant 0 : index
    %c0_4 = arith.constant 0 : index
    %2 = vector.load %arg6[%c0_2, %c0_3, %c0_4] : memref<1x16x32xf32, #tpu.memory_space<vmem>>, vector<1x16x32xf32>
    %3 = vector.shape_cast %2 : vector<1x16x32xf32> to vector<16x32xf32>
    %c0_5 = arith.constant 0 : index
    %c0_6 = arith.constant 0 : index
    %c0_7 = arith.constant 0 : index
    %4 = vector.load %arg7[%c0_5, %c0_6, %c0_7] : memref<1x32x8xf32, #tpu.memory_space<vmem>>, vector<1x32x8xf32>
    %5 = vector.shape_cast %4 : vector<1x32x8xf32> to vector<32x8xf32>
    %c0_8 = arith.constant 0 : index
    %c0_9 = arith.constant 0 : index
    %c0_10 = arith.constant 0 : index
    %6 = vector.load %arg8[%c0_8, %c0_9, %c0_10] : memref<1x32x8xf32, #tpu.memory_space<vmem>>, vector<1x32x8xf32>
    %7 = vector.shape_cast %6 : vector<1x32x8xf32> to vector<32x8xf32>
    %cst = arith.constant dense<0.000000e+00> : vector<16x8xf32>
    %8 = tpu.matmul %1, %5, %cst {dimension_numbers = #tpu.dot_dimension_numbers<[1], [0], [0], [1], [0, 0, 1, 1], [], []>} : vector<16x32xf32>, vector<32x8xf32>, vector<16x8xf32> -> vector<16x8xf32>
    %cst_11 = arith.constant dense<0.000000e+00> : vector<16x8xf32>
    %9 = tpu.matmul %3, %7, %cst_11 {dimension_numbers = #tpu.dot_dimension_numbers<[1], [0], [0], [1], [0, 0, 1, 1], [], []>} : vector<16x32xf32>, vector<32x8xf32>, vector<16x8xf32> -> vector<16x8xf32>
    %cst_12 = arith.constant dense<0.000000e+00> : vector<16x16xf32>
    %10 = tpu.matmul %8, %9, %cst_12 {dimension_numbers = #tpu.dot_dimension_numbers<[1], [1], [0], [0], [0, 0, 1, 0], [], []>} : vector<16x8xf32>, vector<16x8xf32>, vector<16x16xf32> -> vector<16x16xf32>
    %11 = arith.cmpi eq, %arg1, %arg2 : i32
    %12 = arith.extui %11 : i1 to i32
    %c0_i32 = arith.constant 0 : i32
    %13 = arith.cmpi ne, %12, %c0_i32 : i32
    scf.if %13 {
      %17 = tpu.iota {dimensions = array<i32: 0>} : vector<16x16xi32>
      %18 = tpu.iota {dimensions = array<i32: 1>} : vector<16x16xi32>
      %19 = arith.cmpi eq, %17, %18 : vector<16x16xi32>
      %c0_14 = arith.constant 0 : index
      %20 = memref.load %arg4[%c0_14] : memref<1xf32, #tpu.memory_space<smem>>
      %cst_15 = arith.constant 0.000000e+00 : f32
      %21 = vector.broadcast %20 : f32 to vector<16x16xf32>
      %22 = vector.broadcast %cst_15 : f32 to vector<16x16xf32>
      %23 = arith.select %19, %21, %22 : vector<16x16xi1>, vector<16x16xf32>
      %24 = arith.addf %10, %23 : vector<16x16xf32>
      %c0_16 = arith.constant 0 : index
      %c0_17 = arith.constant 0 : index
      %c0_18 = arith.constant 0 : index
      %c0_19 = arith.constant 0 : index
      %25 = vector.load %arg9[%c0_16, %c0_17, %c0_18, %c0_19] : memref<1x1x16x16xf32, #tpu.memory_space<vmem>>, vector<1x1x16x16xf32>
      %26 = vector.shape_cast %25 : vector<1x1x16x16xf32> to vector<16x16xf32>
      %27 = vector.shape_cast %24 : vector<16x16xf32> to vector<1x1x16x16xf32>
      tpu.vector_store %arg9[%c0_16, %c0_17, %c0_18, %c0_19], %27 {strides = array<i32>} : memref<1x1x16x16xf32, #tpu.memory_space<vmem>>, vector<1x1x16x16xf32>,
    } else {
    }
    %14 = arith.cmpi ne, %arg1, %arg2 : i32
    %15 = arith.extui %14 : i1 to i32
    %c0_i32_13 = arith.constant 0 : i32
    %16 = arith.cmpi ne, %15, %c0_i32_13 : i32
    scf.if %16 {
      %c0_14 = arith.constant 0 : index
      %c0_15 = arith.constant 0 : index
      %c0_16 = arith.constant 0 : index
      %c0_17 = arith.constant 0 : index
      %17 = vector.load %arg9[%c0_14, %c0_15, %c0_16, %c0_17] : memref<1x1x16x16xf32, #tpu.memory_space<vmem>>, vector<1x1x16x16xf32>
      %18 = vector.shape_cast %17 : vector<1x1x16x16xf32> to vector<16x16xf32>
      %19 = vector.shape_cast %10 : vector<16x16xf32> to vector<1x1x16x16xf32>
      tpu.vector_store %arg9[%c0_14, %c0_15, %c0_16, %c0_17], %19 {strides = array<i32>} : memref<1x1x16x16xf32, #tpu.memory_space<vmem>>, vector<1x1x16x16xf32>,
    } else {
    }
    return
  }
  func.func @transform_0(%arg0: i32, %arg1: i32, %arg2: i32, %arg3: i32) -> i32 {
    %c0_i32 = arith.constant 0 : i32
    %c0_i32_0 = arith.constant 0 : i32
    return %c0_i32 : i32
  }
  func.func @transform_1(%arg0: i32, %arg1: i32, %arg2: i32, %arg3: i32) -> (i32, i32, i32) {
    %c0_i32 = arith.constant 0 : i32
    %c0_i32_0 = arith.constant 0 : i32
    return %arg0, %arg1, %c0_i32 : i32, i32, i32
  }
  func.func @transform_2(%arg0: i32, %arg1: i32, %arg2: i32, %arg3: i32) -> (i32, i32, i32) {
    %c0_i32 = arith.constant 0 : i32
    %c0_i32_0 = arith.constant 0 : i32
    return %arg0, %arg2, %c0_i32 : i32, i32, i32
  }
  func.func @transform_3(%arg0: i32, %arg1: i32, %arg2: i32, %arg3: i32) -> (i32, i32, i32) {
    %c0_i32 = arith.constant 0 : i32
    %c0_i32_0 = arith.constant 0 : i32
    %c0_i32_1 = arith.constant 0 : i32
    return %arg3, %c0_i32, %c0_i32_0 : i32, i32, i32
  }
  func.func @transform_4(%arg0: i32, %arg1: i32, %arg2: i32, %arg3: i32) -> (i32, i32, i32) {
    %c0_i32 = arith.constant 0 : i32
    %c0_i32_0 = arith.constant 0 : i32
    %c0_i32_1 = arith.constant 0 : i32
    return %arg3, %c0_i32, %c0_i32_0 : i32, i32, i32
  }
  func.func @transform_5(%arg0: i32, %arg1: i32, %arg2: i32, %arg3: i32) -> (i32, i32, i32, i32) {
    %c0_i32 = arith.constant 0 : i32
    return %arg0, %arg3, %arg1, %arg2 : i32, i32, i32, i32
  }
}

</mosaic_0001>

<bundles_post_ra>
// kernel: tpu_custom_call.1
= control target key start
LH: loop header
LB: loop body
LE: loop exit
PB: predicated region body
PF: predicated region fallthrough
CT: control target
= control target key end

     0   :  { %s1248_s0 = inlined_call_operand.<no memory space> [shape: f32[1], index: 0, kind: input, shape index: {}]   ;;  %s1249_s1 = inlined_call_operand.vmem [shape: f32[2,16,32], index: 1, kind: input, shape index: {}]   ;;  %s1250_s2 = inlined_call_operand.vmem [shape: f32[2,16,32], index: 2, kind: input, shape index: {}]   ;;  %s1251_s3 = inlined_call_operand.vmem [shape: f32[4,32,8], index: 3, kind: input, shape index: {}]   ;;  %s1252_s4 = inlined_call_operand.vmem [shape: f32[4,32,8], index: 4, kind: input, shape index: {}]   ;;  %s1253_s5 = inlined_call_operand.hbm [shape: f32[2,4,16,16], index: 5, kind: output, shape index: {}]  }
   0x1   :  { %10 = sst [smem:[#allocation2]] %s1248_s0 }
   0x2   :  { %11 = vsyncpa [#allocation4], 0 }
   0x3   :  { %13 = vsyncpa [#allocation4 + $0x1], 0  ;;  %s1095_s20 = smov 0   ;;  %s1097_s21 = smov 0  }
   0x4   :  { %s1099_s22 = smov 0   ;;  %s1101_s23 = smov 0  }
   0x5   :  { %s1103_s24 = smov 0   ;;  %s1105_s25 = smov 0  }
   0x6   :  { %s1107_s26 = smov 0   ;;  %s1109_s27 = smov 0  }
   0x7 LB: > { %s791_s0 = sadd.s32 4294967295, %s1057_s27   ;;  %s792_s28 = sadd.s32 4294967294, %s1057_s27   ;;  %s1057_s27 = sphi %s1109_s27, %s19_s27   ;;  %s1053_s26 = sphi %s1107_s26, %s1265_s26   ;;  %s1049_s25 = sphi %s1105_s25, %s1264_s25   ;;  %s1045_s24 = sphi %s1103_s24, %s1263_s24   ;;  %s1041_s23 = sphi %s1101_s23, %s1262_s23   ;;  %s1037_s22 = sphi %s1099_s22, %s1261_s22   ;;  %s1033_s21 = sphi %s1097_s21, %s1260_s21   ;;  %s1029_s20 = sphi %s1095_s20, %s1259_s20  }
   0x8   : > { %s34_s29 = sadd.s32 1, %s1049_s25  ;;  %s45_s30 = sadd.s32 1, %s1053_s26 }
   0x9   : > { %p35_p0 = scmp.ge.s32.totalorder %s34_s29, 4  ;;  %p197_p1 = scmp.ne.s32.totalorder %s1037_s22, %s1033_s21 }
   0xa   : > { %p198_p2 = scmp.eq.s32.totalorder %s791_s0, 7  ;;  %p203_p5 = scmp.ne.s32.totalorder %s1033_s21, %s1029_s20 }
   0xb   : > { %s1267_s29 = smov (%p35_p0, %s34_s29), 0  ;;  %s1269_s30 = smov (!%p35_p0, %s45_s30), %s1053_s26 }
   0xc   : > { %s179_s6 = ssub.s32 %s1049_s25, %s1267_s29  ;;  %p1146_p3 = por %p198_p2, %p197_p1 }
   0xd   : > { %p47_p4 = scmp.ge.s32.totalorder %s1269_s30, 2  ;;  %p204_p6 = scmp.eq.s32.totalorder %s792_s28, 7 }
   0xe   : > { %p795_p7 = scmp.ge.s32.totalorder %s1057_s27, 1  ;;  %p267_p9 = scmp.lt.s32.totalorder %s1057_s27, 9 }
   0xf   : > { %s1271_s30 = smov (%p47_p4, %s1269_s30), 0  ;;  %p1155_p8 = por %p204_p6, %p203_p5 }
  0x10   : > { %1256 = sst [smem:[#allocation6_spill]] %s1271_s30  ;;  %s178_s9 = ssub.s32 %s1053_s26, %s1271_s30 }
  0x11   : > { %s187_s10 = sadd.s32 1, %s1037_s22  ;;  %s180_s11 = sor.u32 %s179_s6, %s178_s9 }
  0x12   : > { %p268_p10 = pnand %p795_p7, %p267_p9  ;;  %p185_p11 = scmp.eq.s32.totalorder %s180_s11, 0 }
  0x13   : > { %p338_p12 = scmp.lt.s32.totalorder (!%p268_p10), %s1041_s23, 3  ;;  %p319_p13 = scmp.lt.s32.totalorder (!%p268_p10), %s1045_s24, 1  ;;  %vm361_vm0 = vcmask (!%p268_p10), 261120   ;;  %vm524_vm1 = vcmask (!%p268_p10), 64512   ;;  %v616_v21 = vlaneseq (!%p268_p10)  ;;  %vm629_vm5 = vcmask (!%p268_p10), 130048  }
  0x14   : > { %s1164_s12 = scalar_select %p185_p11, %s1037_s22, %s187_s10  }
  0x15   : > { %271 = sbr.rel (%p268_p10) target bundleno = 496 (0x1f0), region = 40  ;;  %vm885_vm2 = vmpackc.low (!%p268_p10), %vm524_vm1, %vm524_vm1  ;;  %v617_v22 = vshrl.u32 (!%p268_p10), %v616_v21, 7  ;;  %s623_s30 = sld [smem:[#allocation2]] (!%p268_p10)  ;;  %v620_v24 = vand.u32 (!%p268_p10), 127, %v616_v21 }
  0x16   : > { %s814_s17 = sshll.u32 (!%p268_p10), %s1041_s23, 1 }
  0x17   : > { %v618_v23 = vadd.s32 (!%p268_p10), 8, %v617_v22  ;;  %vm621_vm4 = vcmp.eq.s32.totalorder (!%p268_p10), %v617_v22, %v620_v24 }
  0x19   : > { %vm622_vm3 = vcmp.eq.s32.totalorder (!%p268_p10), %v618_v23, %v620_v24 }
  0x1b   : > { %v624_v25 = vstv (!%p268_p10), %s623_s30 }
  0x1c   : > { %s339_s13 = scalar_select %p338_p12, %s1041_s23, 3  ;;  %v626_v26 = vsel %vm622_vm3, %v624_v25, 0.0  ;;  %v625_v27 = vsel %vm621_vm4, %v624_v25, 0.0 }
  0x1d   : > { %s320_s14 = scalar_select %p319_p13, %s1045_s24, 1 }
  0x1e   : > { %s821_s15 = sshll.u32 %s339_s13, 5  ;;  %s1059_s13 = smov [#allocation3]  }
  0x1f   : > { %s347_s18 = scalar_lea.vmem %s1252_s4, %s821_s15  ;;  %s819_s19 = sshll.u32 %s320_s14, 4 }
  0x20   : > { %v357_v0 = vld [vmem:[%s347_s18] sm:$0xff]  ;;  %v358_v1 = vld [vmem:[%s347_s18 + $0x8] sm:$0xff]  ;;  %v359_v2 = vld [vmem:[%s347_s18 + $0x10] sm:$0xff]  ;;  %s336_s6 = scalar_lea.vmem %s1250_s2, %s819_s19  ;;  %s342_s11 = scalar_lea.vmem %s1251_s3, %s821_s15 }
  0x21   : > { %v876_v3 = vpack.c.bf16 %v358_v1, %v357_v0  ;;  %v360_v4 = vld [vmem:[%s347_s18 + $0x18] sm:$0xff]  ;;  %v351_v5 = vld [vmem:[%s336_s6] sm:$0xff]  ;;  %s326_s16 = scalar_lea.vmem %s1249_s1, %s819_s19  ;;  %v354_v8 = vld [vmem:[%s342_s11 + $0x8] sm:$0xff]  ;;  %s315_s14 = sand.u32 1, %s1033_s21  }
  0x22   : > { %v880_v6 = vpack.c.bf16 %v360_v4, %v359_v2  ;;  %858 = vmatprep.mubr.msk.f32.mxu1 %vm361_vm0, %v351_v5  ;;  %v353_v7 = vld [vmem:[%s342_s11] sm:$0xff]  ;;  %v355_v9 = vld [vmem:[%s342_s11 + $0x10] sm:$0xff]  ;;  %v356_v11 = vld [vmem:[%s342_s11 + $0x18] sm:$0xff]  ;;  %s796_s15 = sshll.u32 %s315_s14, 4  ;;  %s815_s18 = sshll.u32 %s1045_s24, 3 }
  0x23   : > { %877 = vmatprep.subr.bf16.mxu1 %v876_v3  ;;  %v868_v10 = vpack.c.bf16 %v354_v8, %v353_v7  ;;  %v349_v12 = vld [vmem:[%s326_s16] sm:$0xff]  ;;  %v872_v13 = vpack.c.bf16 %v356_v11, %v355_v9  ;;  %v352_v14 = vld [vmem:[%s336_s6 + $0x8] sm:$0xff]  ;;  %s655_s19 = sadd.s32 %s815_s18, %s814_s17  ;;  %s317_s0 = scalar_lea.vmem [#allocation3], %s796_s15 }
  0x24   : > { %879 = vmatpush3.bf16.msra.mxu1 %v876_v3  ;;  %847 = vmatprep.mubr.msk.f32.mxu0 %vm361_vm0, %v349_v12  ;;  %v350_v15 = vld [vmem:[%s326_s16 + $0x8] sm:$0xff]  ;;  %s658_s28 = sshll.u32 %s317_s0, 4  ;;  %s816_s6 = sshll.u32 %s655_s19, 7  ;;  %s1189_s28 = int_to_ptr.vmem [resolvable:$true] %s658_s28 }
  0x25   : > { %881 = vmatprep.subr.bf16.mxu1 %v880_v6  ;;  %869 = vmatprep.subr.bf16.mxu0 %v868_v10  ;;  %s1194_s9 = scalar_lea.hbm %s1253_s5, %s816_s6  ;;  %s1196_s10 = scalar_lea.sflag [#allocation4], %s315_s14 }
  0x26   : > { %871 = vmatpush3.bf16.msra.mxu0 %v868_v10  ;;  %s963_s11 = scalar_lea.vmem %s1189_s28, 256  ;;  %s967_s16 = sshll.u32 %s1059_s13, 4  ;;  %s968_s16 = int_to_ptr.vmem [resolvable:$false] %s967_s16 }
  0x27   : > { %873 = vmatprep.subr.bf16.mxu0 %v872_v13  ;;  %p964_p0 = scmp.ne.s32.totalorder %s1189_s28, %s963_s11  ;;  %s969_s30 = scalar_lea.vmem %s968_s16, 512 }
  0x28   : > { %883 = vmatpush3.bf16.msra.mxu1 %v880_v6  ;;  %p970_p4 = scmp.lt.s32.totalorder %s1189_s28, %s968_s16  ;;  %p971_p5 = scmp.lt.s32.totalorder %s969_s30, %s963_s11 }
  0x29   : > { %p965_p1 = pnand %p964_p0, %p1146_p3 }
  0x2a   : > { %875 = vmatpush3.bf16.msra.mxu0 %v872_v13  ;;  %p972_p6 = por %p971_p5, %p970_p4 }
  0x2b   : > { %859 = vmatmul.mubr.msk.f32.vlgmr.msra.gmra.mrb[0].mxu1 %vm361_vm0, %v352_v14  ;;  %p966_p2 = pneg %p965_p1 }
  0x2d   : > { %848 = vmatmul.mubr.msk.f32.vlgmr.msra.gmra.mrb[0].mxu0 %vm361_vm0, %v350_v15  ;;  %p973_p7 = pnand %p972_p6, %p966_p2 }
  0xfe   : > { %v860_v16 = vpop.f32.mrb[0].mxu1 }
  0xff   : > { %v515_v17 = vpop.f32.mrb[1].mxu1 }
 0x100   : > { %v884_v18 = vpack.c.bf16 %v860_v16, %v515_v17  ;;  %v849_v19 = vpop.f32.mrb[0].mxu0 }
 0x101   : > { %v434_v20 = vpop.f32.mrb[1].mxu0 }
 0x102   : > { %886 = vmatprep.subr.msk.bf16.mxu0 %vm885_vm2, %v884_v18  ;;  %865 = vmatprep.mubr.msk.f32.mxu0 %vm524_vm1, %v434_v20 }
 0x103   : > { %889 = vmatpush3.bf16.xpose.msk.msra.mxu0 %vm885_vm2, %v884_v18 }
 0x10a   : > { %866 = vmatmul.mubr.msk.f32.vlgmr.msra.gmra.mrb[2].mxu0 %vm524_vm1, %v849_v19 }
 0x1dd   : > { %v867_v28 = vpop.f32.mrb[2].mxu0 }
 0x1de   : > { %v628_v29 = vadd.f32 %v867_v28, %v626_v26  ;;  %v603_v30 = vpop.f32.mrb[3].mxu0 }
 0x1df   : > { %v627_v31 = vadd.f32 %v625_v27, %v603_v30 }
 0x1e0   : > { %631 = vst.msk [vmem:[%s317_s0 + $0x8] sm:$0xff] %vm629_vm5, %v628_v29 }
 0x1e1   : > { %630 = vst.msk [vmem:[%s317_s0] sm:$0xff] %vm629_vm5, %v627_v31 }
 0x1e2   : > { %976 = shalt.err (!%p973_p7)
}
 0x1e3   : > { %s977_s14 = scalar_lea.hbm %s1194_s9, 256  ;;  %s981_s18 = scalar_lea.hbm %s1253_s5, 2048 }
 0x1e4   : > { %p978_p9 = scmp.ne.s32.totalorder %s1194_s9, %s977_s14  ;;  %p982_p12 = scmp.lt.u32.totalorder %s1194_s9, %s1253_s5 }
 0x1e5   : > { %p983_p13 = scmp.lt.u32.totalorder %s981_s18, %s977_s14  ;;  %p985_p1 = scmp.lt.u32.totalorder %s977_s14, %s1194_s9 }
 0x1e6   : > { %p979_p10 = pnand %p978_p9, %p1146_p3 }
 0x1e7   : > { %p984_p0 = por %p983_p13, %p982_p12 }
 0x1e8   : > { %p980_p11 = pneg %p979_p10 }
 0x1e9   : > { %p986_p2 = por %p985_p1, %p984_p0 }
 0x1eb   : > { %p987_p4 = pnand %p986_p2, %p980_p11 }
 0x1ed   : > { %990 = shalt.err (!%p987_p4)
}
 0x1ee   : > { %s1060_s6 = smov 128   ;;  %s1061_s23 = smov 8  }
 0x1ef   : > { %890 = dma.vmem_to_hbm [thread:$0]  (%p1146_p3), %s1189_s28, 256, %s1194_s9, %s1196_s10, %s1060_s6, %s1060_s6, %s1061_s23  }
 0x1f0 PF: > { %p896_p5 = scmp.ge.s32.totalorder %s1057_s27, 2  ;;  %s673_s24 = sand.u32 1, %s1029_s20  }
 0x1f1   : > { %s674_s11 = scalar_lea.sflag [#allocation4], %s673_s24 }
 0x1f2   : > { %p893_p6 = pnand %p896_p5, %p1155_p8 }
 0x1f4   : > { %1024 = dma.done.wait (!%p893_p6), %s674_s11, 256  }
 0x1f5   : > { %1026 = vsyncadd (!%p893_p6), %s674_s11, 4294967040  ;;  %s19_s27 = sadd.s32 1, %s1057_s27   ;;  %s1258_s7 = sld [smem:[#allocation6_spill]] }
 0x1f6   : > { %p16_p7 = scmp.ge.s32.totalorder %s19_s27, 10   ;;  %s1259_s20 = smov %s1033_s21 }
 0x1f7   : > { %s1260_s21 = smov %s1037_s22  ;;  %s1261_s22 = smov %s1164_s12 }
 0x1f8   : > { %s1262_s23 = smov %s1049_s25  ;;  %s1263_s24 = smov %s1053_s26 }
 0x1f9   : > { %s1264_s25 = smov %s1267_s29  ;;  %18 = sbr.rel (!%p16_p7) target bundleno = 7 (0x7), region = 92 }
 0x1fb   : > { %s1265_s26 = smov %s1258_s7 }
 0x200   :  { %679 = vsyncpa [#allocation4], 1 }
 0x201   :  { %681 = vsyncpa [#allocation4 + $0x1], 1 }

</bundles_post_ra>
